<compile_context>
chip_gen: v5e
topology: v5e:2x2
jax: 0.10.0
libtpu: 0.0.40
codegen_flags: <defaults>
</compile_context>

<pallas_src>
import functools
import math

import jax
import jax.numpy as jnp
from jax import lax
from jax.experimental import pallas as pl
from jax.experimental.pallas import tpu as pltpu


def _vmem_limit_bytes():
    # v5e/v6e: 128 MiB VMEM per core; v7x: 64 MiB. Derive the scoped limit from
    # the device instead of hardcoding a v6e-tuned constant.
    try:
        cap = int(pltpu.get_tpu_info().vmem_capacity_bytes)
        return max(16 * 1024 * 1024, min(3 * cap // 4, 96 * 1024 * 1024))
    except Exception:
        return 32 * 1024 * 1024


# ----------------------------------------------------------------------------
# Fused kernel: per-batch projections + masked attention + output projection
# ----------------------------------------------------------------------------
def _mask_attention_fused_kernel(q_ref, k_ref, v_ref,
                                 wq_ref, bq_ref, wk_ref, bk_ref,
                                 wv_ref, bv_ref, wo_ref, bo_ref,
                                 *rest, n_heads, d_keys, d_values,
                                 mix, has_mask, compute_dtype):
    # rest = (mask_ref?, o_ref, ctx_scratch)
    mask_ref = rest[0] if has_mask else None
    o_ref = rest[-2]
    ctx_sc = rest[-1]

    H, E, Dv = n_heads, d_keys, d_values
    L = q_ref.shape[0]
    dm = wo_ref.shape[1]
    cd = compute_dtype

    # Batched projections for all heads at once: lane-dense MXU matmuls with
    # f32 accumulation.  The 1/sqrt(E) scale was folded into Wq/bq at trace
    # time, so no extra scaling op is needed in the kernel.
    q_all = jnp.dot(q_ref[...], wq_ref[...],
                    preferred_element_type=jnp.float32) + bq_ref[...]   # (L, H*E)
    k_all = jnp.dot(k_ref[...], wk_ref[...],
                    preferred_element_type=jnp.float32) + bk_ref[...]   # (S, H*E)
    v_all = jnp.dot(v_ref[...], wv_ref[...],
                    preferred_element_type=jnp.float32) + bv_ref[...]   # (S, H*Dv)

    if has_mask:
        mask = mask_ref[...].astype(jnp.float32)                        # (L, S)

    acc = jnp.zeros((L, dm), dtype=jnp.float32)

    for h in range(H):                                   # H is small & static
        qh = q_all[:, h * E:(h + 1) * E].astype(cd)
        kh = k_all[:, h * E:(h + 1) * E].astype(cd)
        vh = v_all[:, h * Dv:(h + 1) * Dv].astype(cd)

        # scores = (scale*Q) K^T — contract E on both operands directly
        # (avoids an explicit in-VMEM transpose of K).
        s = lax.dot_general(qh, kh, (((1,), (1,)), ((), ())),
                            preferred_element_type=jnp.float32)         # (L, S)

        # Numerically stable softmax over S, f32 math, EUP approx reciprocal.
        s = s - jnp.max(s, axis=-1, keepdims=True)
        p = jnp.exp(s)
        a = p * pl.reciprocal(jnp.sum(p, axis=-1, keepdims=True), approx=True)

        # TODO(synk): attention dropout on `a` omitted (eval-mode forward).

        if has_mask:
            a = a * mask                 # multiplicative mask AFTER softmax

        ctx_h = jnp.dot(a.astype(cd), vh,
                        preferred_element_type=jnp.float32)             # (L, Dv)

        if mix:
            # Stash in (H, L, Dv) row order; the Informer "mix" layout is a
            # flat reinterpretation of this buffer as (L, H*Dv).
            ctx_sc[h * L:(h + 1) * L, :] = ctx_h
        else:
            # Standard head-concat: head h feeds Wo rows [h*Dv, (h+1)*Dv).
            acc += jnp.dot(ctx_h.astype(cd), wo_ref[h * Dv:(h + 1) * Dv, :],
                           preferred_element_type=jnp.float32)

    if mix:
        # mixed[l, g*Dv + d] = ctx_sc[l*H + g, d]:
        # for interleave group g, rows g::H of the scratch multiply Wo rows
        # [g*Dv, (g+1)*Dv). Accumulate the fused output projection in f32.
        for g in range(H):
            blk = ctx_sc[pl.ds(g, L, stride=H), :]                       # (L, Dv)
            acc += jnp.dot(blk.astype(cd), wo_ref[g * Dv:(g + 1) * Dv, :],
                           preferred_element_type=jnp.float32)

    o_ref[...] = (acc + bo_ref[...]).astype(o_ref.dtype)


# ----------------------------------------------------------------------------
# pallas_call wrapper
# ----------------------------------------------------------------------------
def _fused_forward(queries, keys, values, mask,
                   wq, bq, wk, bk, wv, bv, wo, bo,
                   *, n_heads, d_keys, d_values, mix, scale, compute_dtype):
    out_dtype = queries.dtype
    B, L, dm = queries.shape
    S = keys.shape[1]
    H, E, Dv = n_heads, d_keys, d_values
    cd = compute_dtype
    has_mask = mask is not None

    # Fold the softmax scale into the query projection at trace time; cast MXU
    # operands to the compute dtype (f32 accumulation inside the kernel).
    wq_s = (wq * scale).astype(cd)
    bq_s = (bq * scale).astype(jnp.float32).reshape(1, H * E)
    wk_c = wk.astype(cd)
    bk_c = bk.astype(jnp.float32).reshape(1, H * E)
    wv_c = wv.astype(cd)
    bv_c = bv.astype(jnp.float32).reshape(1, H * Dv)
    wo_c = wo.astype(cd)
    bo_c = bo.astype(jnp.float32).reshape(1, dm)

    q_c = queries.astype(cd)
    k_c = keys.astype(cd)
    v_c = values.astype(cd)

    operands = [q_c, k_c, v_c, wq_s, bq_s, wk_c, bk_c, wv_c, bv_c, wo_c, bo_c]
    in_specs = [
        pl.BlockSpec((None, L, dm), lambda b: (b, 0, 0)),    # queries
        pl.BlockSpec((None, S, dm), lambda b: (b, 0, 0)),    # keys
        pl.BlockSpec((None, S, dm), lambda b: (b, 0, 0)),    # values
        pl.BlockSpec((dm, H * E), lambda b: (0, 0)),         # Wq (pre-scaled)
        pl.BlockSpec((1, H * E), lambda b: (0, 0)),          # bq (pre-scaled)
        pl.BlockSpec((dm, H * E), lambda b: (0, 0)),         # Wk
        pl.BlockSpec((1, H * E), lambda b: (0, 0)),          # bk
        pl.BlockSpec((dm, H * Dv), lambda b: (0, 0)),        # Wv
        pl.BlockSpec((1, H * Dv), lambda b: (0, 0)),         # bv
        pl.BlockSpec((H * Dv, dm), lambda b: (0, 0)),        # Wo
        pl.BlockSpec((1, dm), lambda b: (0, 0)),             # bo
    ]
    if has_mask:
        operands.append(mask.astype(jnp.float32))
        in_specs.append(pl.BlockSpec((L, S), lambda b: (0, 0)))

    flops = 2 * B * (L * dm * H * E + S * dm * H * E + S * dm * H * Dv
                     + H * L * S * (E + Dv) + L * H * Dv * dm)
    bytes_accessed = sum(int(x.size) * jnp.dtype(x.dtype).itemsize
                         for x in operands)
    bytes_accessed += B * L * dm * jnp.dtype(out_dtype).itemsize
    cost = pl.CostEstimate(flops=int(flops),
                           transcendentals=int(B * H * L * S),
                           bytes_accessed=int(bytes_accessed))

    kernel = functools.partial(_mask_attention_fused_kernel,
                               n_heads=H, d_keys=E, d_values=Dv,
                               mix=mix, has_mask=has_mask, compute_dtype=cd)

    return pl.pallas_call(
        kernel,
        out_shape=jax.ShapeDtypeStruct((B, L, dm), out_dtype),
        grid_spec=pltpu.PrefetchScalarGridSpec(
            num_scalar_prefetch=0,
            grid=(B,),     # B >= 2 parallel steps keeps both v7x TCs busy
            in_specs=in_specs,
            out_specs=pl.BlockSpec((None, L, dm), lambda b: (b, 0, 0)),
            scratch_shapes=[pltpu.VMEM((H * L, Dv), jnp.float32)],
        ),
        compiler_params=pltpu.CompilerParams(
            dimension_semantics=("parallel",),
            vmem_limit_bytes=_vmem_limit_bytes(),
        ),
        cost_estimate=cost,
    )(*operands)


# ----------------------------------------------------------------------------
# Layer wrapper (mirrors the PyTorch module)
# ----------------------------------------------------------------------------
class MaskAttentionLayerPallas:
    def __init__(self, d_model, n_heads, d_keys=None, d_values=None, mix=True,
                 dropout=0.1, *, key, dtype=jnp.float32,
                 compute_dtype=jnp.bfloat16):
        d_keys = d_keys or d_model // n_heads
        d_values = d_values or d_model // n_heads
        self.d_model = d_model
        self.n_heads = n_heads
        self.d_keys = d_keys
        self.d_values = d_values
        self.mix = mix
        self.dropout = dropout           # eval-mode forward: dropout = identity
        self.compute_dtype = compute_dtype

        def linear_init(k, fan_in, fan_out):
            kw, kb = jax.random.split(k)
            bound = 1.0 / math.sqrt(fan_in)
            w = jax.random.uniform(kw, (fan_in, fan_out), dtype, -bound, bound)
            b = jax.random.uniform(kb, (fan_out,), dtype, -bound, bound)
            return w, b

        kq, kk, kv, ko = jax.random.split(key, 4)
        self.wq, self.bq = linear_init(kq, d_model, d_keys * n_heads)
        self.wk, self.bk = linear_init(kk, d_model, d_keys * n_heads)
        self.wv, self.bv = linear_init(kv, d_model, d_values * n_heads)
        self.wo, self.bo = linear_init(ko, d_values * n_heads, d_model)

    def __call__(self, queries, keys, values, mask=None):
        scale = 1.0 / math.sqrt(self.d_keys)   # module default: scale=None
        return _fused_forward(queries, keys, values, mask,
                              self.wq, self.bq, self.wk, self.bk,
                              self.wv, self.bv, self.wo, self.bo,
                              n_heads=self.n_heads, d_keys=self.d_keys,
                              d_values=self.d_values, mix=self.mix,
                              scale=scale, compute_dtype=self.compute_dtype)


# ----------------------------------------------------------------------------
# Pure-JAX reference (mirrors the torch math) for verification
# ----------------------------------------------------------------------------
def reference_forward(layer, queries, keys, values, mask=None):
    B, L, dm = queries.shape
    S = keys.shape[1]
    H, E, Dv = layer.n_heads, layer.d_keys, layer.d_values
    Q = (queries @ layer.wq + layer.bq).reshape(B, L, H, E)
    K = (keys @ layer.wk + layer.bk).reshape(B, S, H, E)
    V = (values @ layer.wv + layer.bv).reshape(B, S, H, Dv)
    scale = 1.0 / math.sqrt(E)
    scores = jnp.einsum('blhe,bshe->bhls', Q, K)
    A = jax.nn.softmax(scale * scores, axis=-1)
    if mask is not None:
        A = A * mask
    out = jnp.einsum('bhls,bshd->blhd', A, V)
    if layer.mix:
        out = jnp.transpose(out, (0, 2, 1, 3))
    out = out.reshape(B, L, H * Dv)
    return out @ layer.wo + layer.bo


if __name__ == "__main__":
    key = jax.random.PRNGKey(0)
    k_param, kq, kk, kv = jax.random.split(key, 4)

    B, L, S, d_model, n_heads = 2, 8, 8, 32, 4

    # Same key -> identical weights for the mix=True / mix=False instances.
    layer = MaskAttentionLayerPallas(d_model, n_heads, mix=True, key=k_param,
                                     compute_dtype=jnp.float32)
    layer_nomix = MaskAttentionLayerPallas(d_model, n_heads, mix=False,
                                           key=k_param,
                                           compute_dtype=jnp.float32)

    queries = jax.random.normal(kq, (B, L, d_model), dtype=jnp.float32)
    keys = jax.random.normal(kk, (B, S, d_model), dtype=jnp.float32)
    values = jax.random.normal(kv, (B, S, d_model), dtype=jnp.float32)

    # (L, S) multiplicative post-softmax mask, as in the torch module.
    mask = jnp.tril(jnp.ones((L, S), dtype=jnp.float32))

    # --- f32 MXU operands: tight checks against the pure-JAX reference ------
    out_masked = jax.block_until_ready(layer(queries, keys, values, mask))
    out_nomask = jax.block_until_ready(layer(queries, keys, values, None))
    out_nomix = jax.block_until_ready(layer_nomix(queries, keys, values, mask))

    ref_masked = reference_forward(layer, queries, keys, values, mask)
    ref_nomask = reference_forward(layer, queries, keys, values, None)
    ref_nomix = reference_forward(layer_nomix, queries, keys, values, mask)

    assert out_masked.shape == (B, L, d_model), out_masked.shape
    assert out_nomask.shape == (B, L, d_model), out_nomask.shape
    # Tolerance accounts for the EUP approximate reciprocal in the softmax.
    assert jnp.allclose(out_masked, ref_masked, atol=1e-2, rtol=1e-2), \
        float(jnp.max(jnp.abs(out_masked - ref_masked)))
    assert jnp.allclose(out_nomask, ref_nomask, atol=1e-2, rtol=1e-2), \
        float(jnp.max(jnp.abs(out_nomask - ref_nomask)))
    assert jnp.allclose(out_nomix, ref_nomix, atol=1e-2, rtol=1e-2), \
        float(jnp.max(jnp.abs(out_nomix - ref_nomix)))

    # --- bf16 MXU operands (f32 accumulation): loose smoke check ------------
    layer.compute_dtype = jnp.bfloat16
    out_bf16 = jax.block_until_ready(layer(queries, keys, values, mask))
    assert jnp.allclose(out_bf16.astype(jnp.float32), ref_masked,
                        atol=1e-1, rtol=1e-1), \
        float(jnp.max(jnp.abs(out_bf16.astype(jnp.float32) - ref_masked)))

    print("KERNEL_OK")
</pallas_src>

<mosaic_0001>
module attributes {stable_mosaic.version = 11 : i64} {
  func.func @_mask_attention_fused_kernel(%arg0: i32, %arg1: memref<1x8x32xf32, #tpu.memory_space<vmem>>, %arg2: memref<1x8x32xf32, #tpu.memory_space<vmem>>, %arg3: memref<1x8x32xf32, #tpu.memory_space<vmem>>, %arg4: memref<32x32xf32, #tpu.memory_space<vmem>>, %arg5: memref<1x32xf32, #tpu.memory_space<vmem>>, %arg6: memref<32x32xf32, #tpu.memory_space<vmem>>, %arg7: memref<1x32xf32, #tpu.memory_space<vmem>>, %arg8: memref<32x32xf32, #tpu.memory_space<vmem>>, %arg9: memref<1x32xf32, #tpu.memory_space<vmem>>, %arg10: memref<32x32xf32, #tpu.memory_space<vmem>>, %arg11: memref<1x32xf32, #tpu.memory_space<vmem>>, %arg12: memref<8x8xf32, #tpu.memory_space<vmem>>, %arg13: memref<1x8x32xf32, #tpu.memory_space<vmem>>, %arg14: memref<32x8xf32, #tpu.memory_space<vmem>>) attributes {dimension_semantics = [#tpu.dimension_semantics<parallel>], iteration_bounds = array<i64: 2>, scalar_prefetch = 0 : i64, scratch_operands = 1 : i64, tpu.core_type = #tpu.core_type<tc>, window_params = [{transform_indices = @transform_0, window_bounds = array<i64: 1, 8, 32>}, {transform_indices = @transform_1, window_bounds = array<i64: 1, 8, 32>}, {transform_indices = @transform_2, window_bounds = array<i64: 1, 8, 32>}, {pipeline_mode = #tpu.pipeline_mode<synchronous>, transform_indices = @transform_3, window_bounds = array<i64: 32, 32>}, {pipeline_mode = #tpu.pipeline_mode<synchronous>, transform_indices = @transform_4, window_bounds = array<i64: 1, 32>}, {pipeline_mode = #tpu.pipeline_mode<synchronous>, transform_indices = @transform_5, window_bounds = array<i64: 32, 32>}, {pipeline_mode = #tpu.pipeline_mode<synchronous>, transform_indices = @transform_6, window_bounds = array<i64: 1, 32>}, {pipeline_mode = #tpu.pipeline_mode<synchronous>, transform_indices = @transform_7, window_bounds = array<i64: 32, 32>}, {pipeline_mode = #tpu.pipeline_mode<synchronous>, transform_indices = @transform_8, window_bounds = array<i64: 1, 32>}, {pipeline_mode = #tpu.pipeline_mode<synchronous>, transform_indices = @transform_9, window_bounds = array<i64: 32, 32>}, {pipeline_mode = #tpu.pipeline_mode<synchronous>, transform_indices = @transform_10, window_bounds = array<i64: 1, 32>}, {pipeline_mode = #tpu.pipeline_mode<synchronous>, transform_indices = @transform_11, window_bounds = array<i64: 8, 8>}, {transform_indices = @transform_12, window_bounds = array<i64: 1, 8, 32>}]} {
    %c0 = arith.constant 0 : index
    %c0_0 = arith.constant 0 : index
    %c0_1 = arith.constant 0 : index
    %0 = vector.load %arg1[%c0, %c0_0, %c0_1] : memref<1x8x32xf32, #tpu.memory_space<vmem>>, vector<1x8x32xf32>
    %1 = vector.shape_cast %0 : vector<1x8x32xf32> to vector<8x32xf32>
    %c0_2 = arith.constant 0 : index
    %c0_3 = arith.constant 0 : index
    %2 = vector.load %arg4[%c0_2, %c0_3] : memref<32x32xf32, #tpu.memory_space<vmem>>, vector<32x32xf32>
    %cst = arith.constant dense<0.000000e+00> : vector<8x32xf32>
    %3 = tpu.matmul %1, %2, %cst {dimension_numbers = #tpu.dot_dimension_numbers<[1], [0], [0], [1], [0, 0, 1, 1], [], []>} : vector<8x32xf32>, vector<32x32xf32>, vector<8x32xf32> -> vector<8x32xf32>
    %c0_4 = arith.constant 0 : index
    %c0_5 = arith.constant 0 : index
    %4 = vector.load %arg5[%c0_4, %c0_5] : memref<1x32xf32, #tpu.memory_space<vmem>>, vector<1x32xf32>
    %5 = vector.broadcast %4 : vector<1x32xf32> to vector<8x32xf32>
    %6 = arith.addf %3, %5 : vector<8x32xf32>
    %c0_6 = arith.constant 0 : index
    %c0_7 = arith.constant 0 : index
    %c0_8 = arith.constant 0 : index
    %7 = vector.load %arg2[%c0_6, %c0_7, %c0_8] : memref<1x8x32xf32, #tpu.memory_space<vmem>>, vector<1x8x32xf32>
    %8 = vector.shape_cast %7 : vector<1x8x32xf32> to vector<8x32xf32>
    %c0_9 = arith.constant 0 : index
    %c0_10 = arith.constant 0 : index
    %9 = vector.load %arg6[%c0_9, %c0_10] : memref<32x32xf32, #tpu.memory_space<vmem>>, vector<32x32xf32>
    %cst_11 = arith.constant dense<0.000000e+00> : vector<8x32xf32>
    %10 = tpu.matmul %8, %9, %cst_11 {dimension_numbers = #tpu.dot_dimension_numbers<[1], [0], [0], [1], [0, 0, 1, 1], [], []>} : vector<8x32xf32>, vector<32x32xf32>, vector<8x32xf32> -> vector<8x32xf32>
    %c0_12 = arith.constant 0 : index
    %c0_13 = arith.constant 0 : index
    %11 = vector.load %arg7[%c0_12, %c0_13] : memref<1x32xf32, #tpu.memory_space<vmem>>, vector<1x32xf32>
    %12 = vector.broadcast %11 : vector<1x32xf32> to vector<8x32xf32>
    %13 = arith.addf %10, %12 : vector<8x32xf32>
    %c0_14 = arith.constant 0 : index
    %c0_15 = arith.constant 0 : index
    %c0_16 = arith.constant 0 : index
    %14 = vector.load %arg3[%c0_14, %c0_15, %c0_16] : memref<1x8x32xf32, #tpu.memory_space<vmem>>, vector<1x8x32xf32>
    %15 = vector.shape_cast %14 : vector<1x8x32xf32> to vector<8x32xf32>
    %c0_17 = arith.constant 0 : index
    %c0_18 = arith.constant 0 : index
    %16 = vector.load %arg8[%c0_17, %c0_18] : memref<32x32xf32, #tpu.memory_space<vmem>>, vector<32x32xf32>
    %cst_19 = arith.constant dense<0.000000e+00> : vector<8x32xf32>
    %17 = tpu.matmul %15, %16, %cst_19 {dimension_numbers = #tpu.dot_dimension_numbers<[1], [0], [0], [1], [0, 0, 1, 1], [], []>} : vector<8x32xf32>, vector<32x32xf32>, vector<8x32xf32> -> vector<8x32xf32>
    %c0_20 = arith.constant 0 : index
    %c0_21 = arith.constant 0 : index
    %18 = vector.load %arg9[%c0_20, %c0_21] : memref<1x32xf32, #tpu.memory_space<vmem>>, vector<1x32xf32>
    %19 = vector.broadcast %18 : vector<1x32xf32> to vector<8x32xf32>
    %20 = arith.addf %17, %19 : vector<8x32xf32>
    %c0_22 = arith.constant 0 : index
    %c0_23 = arith.constant 0 : index
    %21 = vector.load %arg12[%c0_22, %c0_23] : memref<8x8xf32, #tpu.memory_space<vmem>>, vector<8x8xf32>
    %cst_24 = arith.constant 0.000000e+00 : f32
    %22 = vector.broadcast %cst_24 : f32 to vector<8x32xf32>
    %23 = vector.extract_strided_slice %6 {offsets = [0, 0], sizes = [8, 8], strides = [1, 1]} : vector<8x32xf32> to vector<8x8xf32>
    %24 = vector.extract_strided_slice %13 {offsets = [0, 0], sizes = [8, 8], strides = [1, 1]} : vector<8x32xf32> to vector<8x8xf32>
    %25 = vector.extract_strided_slice %20 {offsets = [0, 0], sizes = [8, 8], strides = [1, 1]} : vector<8x32xf32> to vector<8x8xf32>
    %cst_25 = arith.constant dense<0.000000e+00> : vector<8x8xf32>
    %26 = tpu.matmul %23, %24, %cst_25 {dimension_numbers = #tpu.dot_dimension_numbers<[1], [1], [0], [0], [0, 0, 1, 0], [], []>} : vector<8x8xf32>, vector<8x8xf32>, vector<8x8xf32> -> vector<8x8xf32>
    %cst_26 = arith.constant dense<0xFF800000> : vector<8xf32>
    %27 = vector.multi_reduction <maximumf>, %26, %cst_26 [1] : vector<8x8xf32> to vector<8xf32>
    %28 = vector.shape_cast %27 : vector<8xf32> to vector<8x1xf32>
    %29 = vector.broadcast %28 : vector<8x1xf32> to vector<8x8xf32>
    %30 = arith.subf %26, %29 : vector<8x8xf32>
    %31 = math.exp %30 : vector<8x8xf32>
    %cst_27 = arith.constant dense<0.000000e+00> : vector<8xf32>
    %32 = vector.multi_reduction <add>, %31, %cst_27 [1] : vector<8x8xf32> to vector<8xf32>
    %33 = vector.shape_cast %32 : vector<8xf32> to vector<8x1xf32>
    %34 = tpu.reciprocal %33 {approx = true} : vector<8x1xf32> -> vector<8x1xf32>
    %35 = vector.broadcast %34 : vector<8x1xf32> to vector<8x8xf32>
    %36 = arith.mulf %31, %35 : vector<8x8xf32>
    %37 = arith.mulf %36, %21 : vector<8x8xf32>
    %cst_28 = arith.constant dense<0.000000e+00> : vector<8x8xf32>
    %38 = tpu.matmul %37, %25, %cst_28 {dimension_numbers = #tpu.dot_dimension_numbers<[1], [0], [0], [1], [0, 0, 1, 1], [], []>} : vector<8x8xf32>, vector<8x8xf32>, vector<8x8xf32> -> vector<8x8xf32>
    %c0_29 = arith.constant 0 : index
    %c0_30 = arith.constant 0 : index
    %39 = vector.load %arg14[%c0_29, %c0_30] : memref<32x8xf32, #tpu.memory_space<vmem>>, vector<8x8xf32>
    tpu.vector_store %arg14[%c0_29, %c0_30], %38 {strides = array<i32>} : memref<32x8xf32, #tpu.memory_space<vmem>>, vector<8x8xf32>,
    %40 = vector.extract_strided_slice %6 {offsets = [0, 8], sizes = [8, 8], strides = [1, 1]} : vector<8x32xf32> to vector<8x8xf32>
    %41 = vector.extract_strided_slice %13 {offsets = [0, 8], sizes = [8, 8], strides = [1, 1]} : vector<8x32xf32> to vector<8x8xf32>
    %42 = vector.extract_strided_slice %20 {offsets = [0, 8], sizes = [8, 8], strides = [1, 1]} : vector<8x32xf32> to vector<8x8xf32>
    %cst_31 = arith.constant dense<0.000000e+00> : vector<8x8xf32>
    %43 = tpu.matmul %40, %41, %cst_31 {dimension_numbers = #tpu.dot_dimension_numbers<[1], [1], [0], [0], [0, 0, 1, 0], [], []>} : vector<8x8xf32>, vector<8x8xf32>, vector<8x8xf32> -> vector<8x8xf32>
    %cst_32 = arith.constant dense<0xFF800000> : vector<8xf32>
    %44 = vector.multi_reduction <maximumf>, %43, %cst_32 [1] : vector<8x8xf32> to vector<8xf32>
    %45 = vector.shape_cast %44 : vector<8xf32> to vector<8x1xf32>
    %46 = vector.broadcast %45 : vector<8x1xf32> to vector<8x8xf32>
    %47 = arith.subf %43, %46 : vector<8x8xf32>
    %48 = math.exp %47 : vector<8x8xf32>
    %cst_33 = arith.constant dense<0.000000e+00> : vector<8xf32>
    %49 = vector.multi_reduction <add>, %48, %cst_33 [1] : vector<8x8xf32> to vector<8xf32>
    %50 = vector.shape_cast %49 : vector<8xf32> to vector<8x1xf32>
    %51 = tpu.reciprocal %50 {approx = true} : vector<8x1xf32> -> vector<8x1xf32>
    %52 = vector.broadcast %51 : vector<8x1xf32> to vector<8x8xf32>
    %53 = arith.mulf %48, %52 : vector<8x8xf32>
    %54 = arith.mulf %53, %21 : vector<8x8xf32>
    %cst_34 = arith.constant dense<0.000000e+00> : vector<8x8xf32>
    %55 = tpu.matmul %54, %42, %cst_34 {dimension_numbers = #tpu.dot_dimension_numbers<[1], [0], [0], [1], [0, 0, 1, 1], [], []>} : vector<8x8xf32>, vector<8x8xf32>, vector<8x8xf32> -> vector<8x8xf32>
    %c8 = arith.constant 8 : index
    %c0_35 = arith.constant 0 : index
    %56 = vector.load %arg14[%c8, %c0_35] : memref<32x8xf32, #tpu.memory_space<vmem>>, vector<8x8xf32>
    tpu.vector_store %arg14[%c8, %c0_35], %55 {strides = array<i32>} : memref<32x8xf32, #tpu.memory_space<vmem>>, vector<8x8xf32>,
    %57 = vector.extract_strided_slice %6 {offsets = [0, 16], sizes = [8, 8], strides = [1, 1]} : vector<8x32xf32> to vector<8x8xf32>
    %58 = vector.extract_strided_slice %13 {offsets = [0, 16], sizes = [8, 8], strides = [1, 1]} : vector<8x32xf32> to vector<8x8xf32>
    %59 = vector.extract_strided_slice %20 {offsets = [0, 16], sizes = [8, 8], strides = [1, 1]} : vector<8x32xf32> to vector<8x8xf32>
    %cst_36 = arith.constant dense<0.000000e+00> : vector<8x8xf32>
    %60 = tpu.matmul %57, %58, %cst_36 {dimension_numbers = #tpu.dot_dimension_numbers<[1], [1], [0], [0], [0, 0, 1, 0], [], []>} : vector<8x8xf32>, vector<8x8xf32>, vector<8x8xf32> -> vector<8x8xf32>
    %cst_37 = arith.constant dense<0xFF800000> : vector<8xf32>
    %61 = vector.multi_reduction <maximumf>, %60, %cst_37 [1] : vector<8x8xf32> to vector<8xf32>
    %62 = vector.shape_cast %61 : vector<8xf32> to vector<8x1xf32>
    %63 = vector.broadcast %62 : vector<8x1xf32> to vector<8x8xf32>
    %64 = arith.subf %60, %63 : vector<8x8xf32>
    %65 = math.exp %64 : vector<8x8xf32>
    %cst_38 = arith.constant dense<0.000000e+00> : vector<8xf32>
    %66 = vector.multi_reduction <add>, %65, %cst_38 [1] : vector<8x8xf32> to vector<8xf32>
    %67 = vector.shape_cast %66 : vector<8xf32> to vector<8x1xf32>
    %68 = tpu.reciprocal %67 {approx = true} : vector<8x1xf32> -> vector<8x1xf32>
    %69 = vector.broadcast %68 : vector<8x1xf32> to vector<8x8xf32>
    %70 = arith.mulf %65, %69 : vector<8x8xf32>
    %71 = arith.mulf %70, %21 : vector<8x8xf32>
    %cst_39 = arith.constant dense<0.000000e+00> : vector<8x8xf32>
    %72 = tpu.matmul %71, %59, %cst_39 {dimension_numbers = #tpu.dot_dimension_numbers<[1], [0], [0], [1], [0, 0, 1, 1], [], []>} : vector<8x8xf32>, vector<8x8xf32>, vector<8x8xf32> -> vector<8x8xf32>
    %c16 = arith.constant 16 : index
    %c0_40 = arith.constant 0 : index
    %73 = vector.load %arg14[%c16, %c0_40] : memref<32x8xf32, #tpu.memory_space<vmem>>, vector<8x8xf32>
    tpu.vector_store %arg14[%c16, %c0_40], %72 {strides = array<i32>} : memref<32x8xf32, #tpu.memory_space<vmem>>, vector<8x8xf32>,
    %74 = vector.extract_strided_slice %6 {offsets = [0, 24], sizes = [8, 8], strides = [1, 1]} : vector<8x32xf32> to vector<8x8xf32>
    %75 = vector.extract_strided_slice %13 {offsets = [0, 24], sizes = [8, 8], strides = [1, 1]} : vector<8x32xf32> to vector<8x8xf32>
    %76 = vector.extract_strided_slice %20 {offsets = [0, 24], sizes = [8, 8], strides = [1, 1]} : vector<8x32xf32> to vector<8x8xf32>
    %cst_41 = arith.constant dense<0.000000e+00> : vector<8x8xf32>
    %77 = tpu.matmul %74, %75, %cst_41 {dimension_numbers = #tpu.dot_dimension_numbers<[1], [1], [0], [0], [0, 0, 1, 0], [], []>} : vector<8x8xf32>, vector<8x8xf32>, vector<8x8xf32> -> vector<8x8xf32>
    %cst_42 = arith.constant dense<0xFF800000> : vector<8xf32>
    %78 = vector.multi_reduction <maximumf>, %77, %cst_42 [1] : vector<8x8xf32> to vector<8xf32>
    %79 = vector.shape_cast %78 : vector<8xf32> to vector<8x1xf32>
    %80 = vector.broadcast %79 : vector<8x1xf32> to vector<8x8xf32>
    %81 = arith.subf %77, %80 : vector<8x8xf32>
    %82 = math.exp %81 : vector<8x8xf32>
    %cst_43 = arith.constant dense<0.000000e+00> : vector<8xf32>
    %83 = vector.multi_reduction <add>, %82, %cst_43 [1] : vector<8x8xf32> to vector<8xf32>
    %84 = vector.shape_cast %83 : vector<8xf32> to vector<8x1xf32>
    %85 = tpu.reciprocal %84 {approx = true} : vector<8x1xf32> -> vector<8x1xf32>
    %86 = vector.broadcast %85 : vector<8x1xf32> to vector<8x8xf32>
    %87 = arith.mulf %82, %86 : vector<8x8xf32>
    %88 = arith.mulf %87, %21 : vector<8x8xf32>
    %cst_44 = arith.constant dense<0.000000e+00> : vector<8x8xf32>
    %89 = tpu.matmul %88, %76, %cst_44 {dimension_numbers = #tpu.dot_dimension_numbers<[1], [0], [0], [1], [0, 0, 1, 1], [], []>} : vector<8x8xf32>, vector<8x8xf32>, vector<8x8xf32> -> vector<8x8xf32>
    %c24 = arith.constant 24 : index
    %c0_45 = arith.constant 0 : index
    %90 = vector.load %arg14[%c24, %c0_45] : memref<32x8xf32, #tpu.memory_space<vmem>>, vector<8x8xf32>
    tpu.vector_store %arg14[%c24, %c0_45], %89 {strides = array<i32>} : memref<32x8xf32, #tpu.memory_space<vmem>>, vector<8x8xf32>,
    %c0_46 = arith.constant 0 : index
    %c0_47 = arith.constant 0 : index
    %91 = tpu.strided_load %arg14[%c0_46, %c0_47] {strides = array<i32: 4, 1>} : memref<32x8xf32, #tpu.memory_space<vmem>>, vector<8x8xf32>
    %c0_48 = arith.constant 0 : index
    %c0_49 = arith.constant 0 : index
    %92 = vector.load %arg10[%c0_48, %c0_49] : memref<32x32xf32, #tpu.memory_space<vmem>>, vector<8x32xf32>
    %cst_50 = arith.constant dense<0.000000e+00> : vector<8x32xf32>
    %93 = tpu.matmul %91, %92, %cst_50 {dimension_numbers = #tpu.dot_dimension_numbers<[1], [0], [0], [1], [0, 0, 1, 1], [], []>} : vector<8x8xf32>, vector<8x32xf32>, vector<8x32xf32> -> vector<8x32xf32>
    %94 = arith.addf %22, %93 : vector<8x32xf32>
    %c1 = arith.constant 1 : index
    %c0_51 = arith.constant 0 : index
    %95 = tpu.strided_load %arg14[%c1, %c0_51] {strides = array<i32: 4, 1>} : memref<32x8xf32, #tpu.memory_space<vmem>>, vector<8x8xf32>
    %c8_52 = arith.constant 8 : index
    %c0_53 = arith.constant 0 : index
    %96 = vector.load %arg10[%c8_52, %c0_53] : memref<32x32xf32, #tpu.memory_space<vmem>>, vector<8x32xf32>
    %cst_54 = arith.constant dense<0.000000e+00> : vector<8x32xf32>
    %97 = tpu.matmul %95, %96, %cst_54 {dimension_numbers = #tpu.dot_dimension_numbers<[1], [0], [0], [1], [0, 0, 1, 1], [], []>} : vector<8x8xf32>, vector<8x32xf32>, vector<8x32xf32> -> vector<8x32xf32>
    %98 = arith.addf %94, %97 : vector<8x32xf32>
    %c2 = arith.constant 2 : index
    %c0_55 = arith.constant 0 : index
    %99 = tpu.strided_load %arg14[%c2, %c0_55] {strides = array<i32: 4, 1>} : memref<32x8xf32, #tpu.memory_space<vmem>>, vector<8x8xf32>
    %c16_56 = arith.constant 16 : index
    %c0_57 = arith.constant 0 : index
    %100 = vector.load %arg10[%c16_56, %c0_57] : memref<32x32xf32, #tpu.memory_space<vmem>>, vector<8x32xf32>
    %cst_58 = arith.constant dense<0.000000e+00> : vector<8x32xf32>
    %101 = tpu.matmul %99, %100, %cst_58 {dimension_numbers = #tpu.dot_dimension_numbers<[1], [0], [0], [1], [0, 0, 1, 1], [], []>} : vector<8x8xf32>, vector<8x32xf32>, vector<8x32xf32> -> vector<8x32xf32>
    %102 = arith.addf %98, %101 : vector<8x32xf32>
    %c3 = arith.constant 3 : index
    %c0_59 = arith.constant 0 : index
    %103 = tpu.strided_load %arg14[%c3, %c0_59] {strides = array<i32: 4, 1>} : memref<32x8xf32, #tpu.memory_space<vmem>>, vector<8x8xf32>
    %c24_60 = arith.constant 24 : index
    %c0_61 = arith.constant 0 : index
    %104 = vector.load %arg10[%c24_60, %c0_61] : memref<32x32xf32, #tpu.memory_space<vmem>>, vector<8x32xf32>
    %cst_62 = arith.constant dense<0.000000e+00> : vector<8x32xf32>
    %105 = tpu.matmul %103, %104, %cst_62 {dimension_numbers = #tpu.dot_dimension_numbers<[1], [0], [0], [1], [0, 0, 1, 1], [], []>} : vector<8x8xf32>, vector<8x32xf32>, vector<8x32xf32> -> vector<8x32xf32>
    %106 = arith.addf %102, %105 : vector<8x32xf32>
    %c0_63 = arith.constant 0 : index
    %c0_64 = arith.constant 0 : index
    %107 = vector.load %arg11[%c0_63, %c0_64] : memref<1x32xf32, #tpu.memory_space<vmem>>, vector<1x32xf32>
    %108 = vector.broadcast %107 : vector<1x32xf32> to vector<8x32xf32>
    %109 = arith.addf %106, %108 : vector<8x32xf32>
    %c0_65 = arith.constant 0 : index
    %c0_66 = arith.constant 0 : index
    %c0_67 = arith.constant 0 : index
    %110 = vector.load %arg13[%c0_65, %c0_66, %c0_67] : memref<1x8x32xf32, #tpu.memory_space<vmem>>, vector<1x8x32xf32>
    %111 = vector.shape_cast %110 : vector<1x8x32xf32> to vector<8x32xf32>
    %112 = vector.shape_cast %109 : vector<8x32xf32> to vector<1x8x32xf32>
    tpu.vector_store %arg13[%c0_65, %c0_66, %c0_67], %112 {strides = array<i32>} : memref<1x8x32xf32, #tpu.memory_space<vmem>>, vector<1x8x32xf32>,
    return
  }
  func.func @transform_0(%arg0: i32) -> (i32, i32, i32) {
    %c0_i32 = arith.constant 0 : i32
    %c0_i32_0 = arith.constant 0 : i32
    %c0_i32_1 = arith.constant 0 : i32
    return %arg0, %c0_i32, %c0_i32_0 : i32, i32, i32
  }
  func.func @transform_1(%arg0: i32) -> (i32, i32, i32) {
    %c0_i32 = arith.constant 0 : i32
    %c0_i32_0 = arith.constant 0 : i32
    %c0_i32_1 = arith.constant 0 : i32
    return %arg0, %c0_i32, %c0_i32_0 : i32, i32, i32
  }
  func.func @transform_2(%arg0: i32) -> (i32, i32, i32) {
    %c0_i32 = arith.constant 0 : i32
    %c0_i32_0 = arith.constant 0 : i32
    %c0_i32_1 = arith.constant 0 : i32
    return %arg0, %c0_i32, %c0_i32_0 : i32, i32, i32
  }
  func.func @transform_3(%arg0: i32) -> (i32, i32) {
    %c0_i32 = arith.constant 0 : i32
    %c0_i32_0 = arith.constant 0 : i32
    %c0_i32_1 = arith.constant 0 : i32
    return %c0_i32, %c0_i32_0 : i32, i32
  }
  func.func @transform_4(%arg0: i32) -> (i32, i32) {
    %c0_i32 = arith.constant 0 : i32
    %c0_i32_0 = arith.constant 0 : i32
    %c0_i32_1 = arith.constant 0 : i32
    return %c0_i32, %c0_i32_0 : i32, i32
  }
  func.func @transform_5(%arg0: i32) -> (i32, i32) {
    %c0_i32 = arith.constant 0 : i32
    %c0_i32_0 = arith.constant 0 : i32
    %c0_i32_1 = arith.constant 0 : i32
    return %c0_i32, %c0_i32_0 : i32, i32
  }
  func.func @transform_6(%arg0: i32) -> (i32, i32) {
    %c0_i32 = arith.constant 0 : i32
    %c0_i32_0 = arith.constant 0 : i32
    %c0_i32_1 = arith.constant 0 : i32
    return %c0_i32, %c0_i32_0 : i32, i32
  }
  func.func @transform_7(%arg0: i32) -> (i32, i32) {
    %c0_i32 = arith.constant 0 : i32
    %c0_i32_0 = arith.constant 0 : i32
    %c0_i32_1 = arith.constant 0 : i32
    return %c0_i32, %c0_i32_0 : i32, i32
  }
  func.func @transform_8(%arg0: i32) -> (i32, i32) {
    %c0_i32 = arith.constant 0 : i32
    %c0_i32_0 = arith.constant 0 : i32
    %c0_i32_1 = arith.constant 0 : i32
    return %c0_i32, %c0_i32_0 : i32, i32
  }
  func.func @transform_9(%arg0: i32) -> (i32, i32) {
    %c0_i32 = arith.constant 0 : i32
    %c0_i32_0 = arith.constant 0 : i32
    %c0_i32_1 = arith.constant 0 : i32
    return %c0_i32, %c0_i32_0 : i32, i32
  }
  func.func @transform_10(%arg0: i32) -> (i32, i32) {
    %c0_i32 = arith.constant 0 : i32
    %c0_i32_0 = arith.constant 0 : i32
    %c0_i32_1 = arith.constant 0 : i32
    return %c0_i32, %c0_i32_0 : i32, i32
  }
  func.func @transform_11(%arg0: i32) -> (i32, i32) {
    %c0_i32 = arith.constant 0 : i32
    %c0_i32_0 = arith.constant 0 : i32
    %c0_i32_1 = arith.constant 0 : i32
    return %c0_i32, %c0_i32_0 : i32, i32
  }
  func.func @transform_12(%arg0: i32) -> (i32, i32, i32) {
    %c0_i32 = arith.constant 0 : i32
    %c0_i32_0 = arith.constant 0 : i32
    %c0_i32_1 = arith.constant 0 : i32
    return %arg0, %c0_i32, %c0_i32_0 : i32, i32, i32
  }
}

</mosaic_0001>

<bundles_post_ra>
// kernel: tpu_custom_call.1
= control target key start
LH: loop header
LB: loop body
LE: loop exit
PB: predicated region body
PF: predicated region fallthrough
CT: control target
= control target key end

     0   :  { %s2184_s0 = inlined_call_operand.hbm [shape: f32[2,8,32], index: 0, kind: input, shape index: {}]   ;;  %s2185_s1 = inlined_call_operand.hbm [shape: f32[2,8,32], index: 1, kind: input, shape index: {}]   ;;  %s2186_s2 = inlined_call_operand.hbm [shape: f32[2,8,32], index: 2, kind: input, shape index: {}]   ;;  %s2187_s3 = inlined_call_operand.hbm [shape: f32[32,32], index: 3, kind: input, shape index: {}]   ;;  %s2188_s4 = inlined_call_operand.vmem [shape: f32[1,32], index: 4, kind: input, shape index: {}]   ;;  %s2189_s5 = inlined_call_operand.hbm [shape: f32[32,32], index: 5, kind: input, shape index: {}]   ;;  %s2190_s6 = inlined_call_operand.vmem [shape: f32[1,32], index: 6, kind: input, shape index: {}]   ;;  %s2191_s7 = inlined_call_operand.hbm [shape: f32[32,32], index: 7, kind: input, shape index: {}]   ;;  %s2192_s8 = inlined_call_operand.hbm [shape: f32[1,32], index: 8, kind: input, shape index: {}]   ;;  %s2193_s9 = inlined_call_operand.hbm [shape: f32[32,32], index: 9, kind: input, shape index: {}]   ;;  %s2194_s10 = inlined_call_operand.hbm [shape: f32[1,32], index: 10, kind: input, shape index: {}]   ;;  %s2195_s11 = inlined_call_operand.vmem [shape: f32[8,8], index: 11, kind: input, shape index: {}]   ;;  %s2196_s12 = inlined_call_operand.hbm [shape: f32[2,8,32], index: 12, kind: output, shape index: {}]  }
   0x1   :  { %2209 = sst [smem:[#allocation31_spill]] %s2185_s1 }
   0x2   :  { %2210 = sst [smem:[#allocation32_spill]] %s2187_s3 }
   0x3   :  { %2211 = sst [smem:[#allocation33_spill]] %s2191_s7 }
   0x4   :  { %2212 = sst [smem:[#allocation34_spill]] %s2193_s9 }
   0x5   :  { %2213 = sst [smem:[#allocation35_spill]] %s2195_s11 }
   0x6   :  { %2214 = sst [smem:[#allocation36_spill]] %s2196_s12 }
   0x7   :  { %17 = vsyncpa [#allocation4], 0 }
   0x8   :  { %19 = vsyncpa [#allocation4 + $0x1], 0 }
   0x9   :  { %20 = vsyncpa [#allocation7], 0 }
   0xa   :  { %22 = vsyncpa [#allocation7 + $0x1], 0 }
   0xb   :  { %23 = vsyncpa [#allocation10], 0 }
   0xc   :  { %24 = vsyncpa [#allocation13], 0 }
   0xd   :  { %25 = vsyncpa [#allocation16], 0 }
   0xe   :  { %26 = vsyncpa [#allocation5], 0 }
   0xf   :  { %28 = vsyncpa [#allocation5 + $0x1], 0  ;;  %s1882_s21 = smov 0   ;;  %s1884_s22 = smov 0  }
  0x10   :  { %s1886_s23 = smov 0   ;;  %s1888_s24 = smov 0  }
  0x11 LB: > { %2215 = sst [smem:[#allocation25_spill]] %s1792_s21  ;;  %s1906_s28 = sadd.s32 4294967295, %s1804_s24   ;;  %s1804_s24 = sphi %s1888_s24, %s2247_s24   ;;  %s1800_s23 = sphi %s1886_s23, %s2251_s23   ;;  %s1796_s22 = sphi %s1884_s22, %s2250_s22   ;;  %s1792_s21 = sphi %s1882_s21, %s2249_s21  }
  0x12   : > { %2216 = sst [smem:[#allocation26_spill]] %s1804_s24  ;;  %p1262_p0 = scmp.ge.s32.totalorder %s1804_s24, 1 }
  0x13   : > { %s2217_s3 = sld [smem:[#allocation32_spill]]  ;;  %p2208_p1 = scmp.eq.s32.totalorder %s1906_s28, 0 }
  0x14   : > { %p332_p2 = scmp.lt.s32.totalorder %s1804_s24, 3  ;;  %s1806_s30 = smov [#allocation9]  }
  0x15   : > { %s345_s13 = sshll.u32 %s1806_s30, 4  ;;  %s2219_s7 = sld [smem:[#allocation33_spill]]  ;;  %s346_s13 = int_to_ptr.vmem [resolvable:$true] %s345_s13 }
  0x16   : > { %p1911_p3 = pnand %p1262_p0, %p332_p2  ;;  %s2221_s9 = sld [smem:[#allocation34_spill]] }
  0x17   : > { %s1807_s25 = smov [#allocation12]   ;;  %s2197_s30 = smov 128  }
  0x18   : > { %p1342_p4 = pneg %p1911_p3  ;;  %s379_s26 = sshll.u32 %s1807_s25, 4  ;;  %s380_s26 = int_to_ptr.vmem [resolvable:$true] %s379_s26 }
  0x19   : > { %s343_s27 = sshll.u32 %s2217_s3, 4  ;;  %s2198_s14 = smov 8   ;;  %s344_s27 = int_to_ptr.hbm [resolvable:$true] %s343_s27 }
  0x1a   : > { %p1923_p6 = pnand %p1342_p4, %p2208_p1  ;;  %s1810_s15 = smov [#allocation15]  }
  0x1b   : > { %s377_s16 = sshll.u32 %s2219_s7, 4  ;;  %s405_s18 = sshll.u32 %s1810_s15, 4  ;;  %s378_s16 = int_to_ptr.hbm [resolvable:$true] %s377_s16  ;;  %s406_s18 = int_to_ptr.vmem [resolvable:$true] %s405_s18 }
  0x1c   : > { %s403_s20 = sshll.u32 %s2221_s9, 4  ;;  %s41_s19 = sadd.s32 1, %s1800_s23  ;;  %s404_s20 = int_to_ptr.hbm [resolvable:$true] %s403_s20 }
  0x1d   : > { %1345 = dma.hbm_to_vmem [thread:$0]  (!%p1923_p6), %s344_s27, 512, %s346_s13, [#allocation10], %s2197_s30, %s2197_s30, %s2198_s14  }
  0x1e   : > { %1351 = dma.hbm_to_vmem [thread:$0]  (!%p1923_p6), %s378_s16, 512, %s380_s26, [#allocation13], %s2197_s30, %s2197_s30, %s2198_s14  }
  0x1f   : > { %1357 = dma.hbm_to_vmem [thread:$0]  (!%p1923_p6), %s404_s20, 512, %s406_s18, [#allocation16], %s2197_s30, %s2197_s30, %s2198_s14  }
  0x20   : > { %s1261_s27 = sadd.s32 4294967294, %s1804_s24   ;;  %s1947_s13 = sadd.s32 1, %s1804_s24  }
  0x21   : > { %2222 = sst [smem:[#allocation27_spill]] %s1947_s13  ;;  %s38_s25 = ssub.s32 %s1804_s24, %s1947_s13 }
  0x22   : > { %p48_p7 = scmp.ne.s32.totalorder %s1800_s23, %s1796_s22  ;;  %p39_p8 = scmp.eq.s32.totalorder %s38_s25, 0 }
  0x23   : > { %p49_p9 = scmp.eq.s32.totalorder %s1804_s24, 0  ;;  %p54_p10 = scmp.ne.s32.totalorder %s1796_s22, %s1792_s21 }
  0x24   : > { %p319_p11 = scmp.eq.s32.totalorder %s1906_s28, 1  ;;  %p325_p2 = scmp.eq.s32.totalorder %s1261_s27, 1 }
  0x25   : > { %s1959_s16 = scalar_select %p39_p8, %s1800_s23, %s41_s19  }
  0x26   : > { %p50_p12 = por %p49_p9, %p48_p7  ;;  %p1963_p13 = por %p2208_p1, %p54_p10 }
  0x27   : > { %2223 = sst [smem:[#allocation28_spill]] %s1959_s16  ;;  %p1967_p0 = por %p319_p11, %p48_p7 }
  0x28   : > { %p1381_p4 = scmp.lt.s32.totalorder %s1804_s24, 2  ;;  %s2201_s15 = sand.u32 1, %s1800_s23  }
  0x29   : > { %s2225_s26 = scalar_select %p1967_p0, 1, 0 }
  0x2a   : > { %p1973_p5 = por %p325_p2, %p54_p10  ;;  %s1979_s19 = sshll.u32 %s2201_s15, 3 }
  0x2b   : > { %2226 = sst [smem:[#allocation29_spill]] %s2225_s26  ;;  %s1982_s25 = sshll.u32 %s1804_s24, 3 }
  0x2c   : > { %s2227_s18 = scalar_select %p1973_p5, 1, 0 }
  0x2d   : > { %p1984_p8 = pnand %p1381_p4, %p50_p12  ;;  %s453_s27 = sand.u32 1, %s1804_s24  }
  0x2e   : > { %2228 = sst [smem:[#allocation30_spill]] %s2227_s18  ;;  %s457_s9 = scalar_lea.vmem [#allocation6], %s1979_s19 }
  0x2f   : > { %s2230_s1 = sld [smem:[#allocation31_spill]]  ;;  %s465_s16 = sshll.u32 %s457_s9, 4  ;;  %s466_s16 = int_to_ptr.vmem [resolvable:$true] %s465_s16 }
  0x30   : > { %s360_s21 = sshll.u32 %s2189_s5, 4  ;;  %s1997_s26 = scalar_lea.sflag [#allocation7], %s453_s27  ;;  %s361_s21 = int_to_ptr.hbm [resolvable:$true] %s360_s21 }
  0x31   : > { %p1546_p9 = pneg %p1984_p8 }
  0x35   : > { %s461_s7 = scalar_lea.hbm %s2230_s1, %s1982_s25  ;;  %s1549_s9 = scalar_lea.hbm %s2230_s1, 16 }
  0x36   : > { %s463_s13 = sshll.u32 %s461_s7, 4  ;;  %s464_s13 = int_to_ptr.hbm [resolvable:$true] %s463_s13 }
  0x37   : > { %s1542_s12 = sshra.s32 %s464_s13, 4  ;;  %s1543_s12 = int_to_ptr.hbm [resolvable:$true] %s1542_s12 }
  0x38   : > { %s1544_s11 = scalar_lea.hbm %s1543_s12, 8  ;;  %p1550_p12 = scmp.lt.s32.totalorder %s1543_s12, %s2230_s1 }
  0x39   : > { %p1545_p7 = scmp.ne.s32.totalorder %s1543_s12, %s1544_s11  ;;  %p1551_p2 = scmp.lt.s32.totalorder %s1549_s9, %s1544_s11 }
  0x3b   : > { %p1547_p10 = pnand %p1546_p9, %p1545_p7  ;;  %p1552_p4 = por %p1551_p2, %p1550_p12 }
  0x3d   : > { %p1548_p11 = pneg %p1547_p10 }
  0x3f   : > { %p1553_p1 = pnand %p1552_p4, %p1548_p11 }
  0x41   : > { %1556 = shalt.err (!%p1553_p1)
}
  0x42   : > { %1367 = dma.hbm_to_vmem [thread:$0]  (!%p1984_p8), %s464_s13, 128, %s466_s16, %s1997_s26  }
  0x43   : > { %s1811_s15 = smov [#allocation11]   ;;  %s392_s12 = sshll.u32 %s2192_s8, 4  ;;  %s393_s12 = int_to_ptr.hbm [resolvable:$true] %s392_s12 }
  0x44   : > { %s362_s18 = sshll.u32 %s1811_s15, 4  ;;  %s2231_s11 = smov 8   ;;  %s363_s18 = int_to_ptr.vmem [resolvable:$true] %s362_s18 }
  0x45   : > { %s2232_s24 = smov 128   ;;  %s418_s13 = sshll.u32 %s2194_s10, 4  ;;  %s419_s13 = int_to_ptr.hbm [resolvable:$true] %s418_s13 }
  0x46   : > { %1348 = dma.hbm_to_vmem [thread:$0]  (!%p1923_p6), %s361_s21, 512, %s363_s18, [#allocation10], %s2232_s24, %s2232_s24, %s2231_s11  }
  0x47   : > { %s1812_s16 = smov [#allocation14]   ;;  %s1813_s15 = smov [#allocation17]  }
  0x48   : > { %s394_s14 = sshll.u32 %s1812_s16, 4  ;;  %s420_s27 = sshll.u32 %s1813_s15, 4  ;;  %s395_s14 = int_to_ptr.vmem [resolvable:$true] %s394_s14  ;;  %s421_s27 = int_to_ptr.vmem [resolvable:$true] %s420_s27 }
  0x49   : > { %1354 = dma.hbm_to_vmem [thread:$0]  (!%p1923_p6), %s393_s12, 16, %s395_s14, [#allocation13]  }
  0x4a   : > { %1360 = dma.hbm_to_vmem [thread:$0]  (!%p1923_p6), %s419_s13, 16, %s421_s27, [#allocation16]  }
  0x4b   : > { %s442_s21 = scalar_lea.hbm %s2184_s0, %s1982_s25  ;;  %s438_s18 = scalar_lea.vmem [#allocation3], %s1979_s19 }
  0x4c   : > { %s446_s11 = sshll.u32 %s438_s18, 4  ;;  %s444_s24 = sshll.u32 %s442_s21, 4  ;;  %s447_s11 = int_to_ptr.vmem [resolvable:$true] %s446_s11  ;;  %s445_s24 = int_to_ptr.hbm [resolvable:$true] %s444_s24 }
  0x4d   : > { %s2233_s7 = sand.u32 1, %s1800_s23   ;;  %s1662_s16 = sshra.s32 %s445_s24, 4  ;;  %s1663_s16 = int_to_ptr.hbm [resolvable:$true] %s1662_s16 }
  0x4e   : > { %s435_s9 = scalar_lea.sflag [#allocation4], %s2233_s7  ;;  %s1664_s12 = scalar_lea.hbm %s1663_s16, 8 }
  0x4f   : > { %p1665_p1 = scmp.ne.s32.totalorder %s1663_s16, %s1664_s12  ;;  %s1669_s1 = scalar_lea.hbm %s2184_s0, 16 }
  0x50   : > { %p1670_p6 = scmp.lt.s32.totalorder %s1663_s16, %s2184_s0  ;;  %p1671_p11 = scmp.lt.s32.totalorder %s1669_s1, %s1664_s12 }
  0x51   : > { %p1667_p7 = pnand %p1665_p1, %p1546_p9 }
  0x52   : > { %p1672_p12 = por %p1671_p11, %p1670_p6 }
  0x53   : > { %p1668_p10 = pneg %p1667_p7 }
  0x55   : > { %p1673_p2 = pnand %p1672_p12, %p1668_p10 }
  0x57   : > { %1676 = shalt.err (!%p1673_p2)
}
  0x58   : > { %1364 = dma.hbm_to_vmem [thread:$0]  (!%p1984_p8), %s445_s24, 128, %s447_s11, %s435_s9  }
  0x59   : > { %s480_s21 = scalar_lea.hbm %s2186_s2, %s1982_s25  ;;  %s476_s18 = scalar_lea.vmem [#allocation8], %s1979_s19 }
  0x5a   : > { %s484_s7 = sshll.u32 %s476_s18, 4  ;;  %s482_s17 = sshll.u32 %s480_s21, 4  ;;  %s485_s7 = int_to_ptr.vmem [resolvable:$true] %s484_s7  ;;  %s483_s17 = int_to_ptr.hbm [resolvable:$true] %s482_s17 }
  0x5b   : > { %s1692_s16 = sshra.s32 %s483_s17, 4  ;;  %s1699_s11 = scalar_lea.hbm %s2186_s2, 16  ;;  %s1693_s16 = int_to_ptr.hbm [resolvable:$true] %s1692_s16 }
  0x5c   : > { %s1694_s12 = scalar_lea.hbm %s1693_s16, 8  ;;  %p1700_p10 = scmp.lt.s32.totalorder %s1693_s16, %s2186_s2 }
  0x5d   : > { %p1695_p4 = scmp.ne.s32.totalorder %s1693_s16, %s1694_s12  ;;  %p1701_p6 = scmp.lt.s32.totalorder %s1699_s11, %s1694_s12 }
  0x5f   : > { %p1697_p1 = pnand %p1695_p4, %p1546_p9  ;;  %p1702_p11 = por %p1701_p6, %p1700_p10 }
  0x61   : > { %p1698_p7 = pneg %p1697_p1 }
  0x63   : > { %p1703_p12 = pnand %p1702_p11, %p1698_p7 }
  0x65   : > { %1706 = shalt.err (!%p1703_p12)
}
  0x66   : > { %1370 = dma.hbm_to_vmem [thread:$0]  (!%p1984_p8), %s483_s17, 128, %s485_s7, %s1997_s26  }
  0x67   : > { %493 = sbr.rel (%p1911_p3) target bundleno = 1064 (0x428), region = 68  ;;  %s2066_s19 = sand.u32 (!%p1911_p3), 1, %s1796_s22  }
  0x68   : > { %s2069_s25 = sshll.u32 (!%p1911_p3), %s2066_s19, 3  ;;  %s496_s14 = scalar_lea.sflag (!%p1911_p3), [#allocation4], %s2066_s19 }
  0x69   : > { %s499_s15 = scalar_lea.vmem (!%p1911_p3), [#allocation3], %s2069_s25 }
  0x6c   : > { %1767 = dma.done.wait (%p1963_p13), %s496_s14, 128  }
  0x6d   : > { %1769 = vsyncadd (%p1963_p13), %s496_s14, 4294967168  ;;  %s505_s29 = sand.u32 1, %s1906_s28   ;;  %s509_s26 = scalar_lea.vmem [#allocation6], %s2069_s25 }
  0x6e   : > { %s506_s30 = scalar_lea.sflag [#allocation7], %s505_s29 }
  0x6f   : > { %1771 = dma.done.wait (%p1963_p13), %s506_s30, 256  }
  0x70   : > { %1773 = vsyncadd (%p1963_p13), %s506_s30, 4294967040  ;;  %s519_s27 = scalar_lea.vmem [#allocation8], %s2069_s25  ;;  %p2234_p3 = scmp.eq.s32.totalorder %s1906_s28, 0 }
  0x72   : > { %1775 = dma.done.wait (%p2234_p3), [#allocation10], 1024   ;;  %p2235_p8 = pmov %p2234_p3 }
  0x73   : > { %p2236_p9 = pmov %p2234_p3 }
  0x74   : > { %1777 = vsyncadd (%p2235_p8), [#allocation10], 4294966272 }
  0x75   : > { %1779 = dma.done.wait (%p2236_p9), [#allocation13], 528   ;;  %p2237_p2 = pmov %p2234_p3 }
  0x77   : > { %1781 = vsyncadd (%p2237_p2), [#allocation13], 4294966768  ;;  %p2238_p4 = pmov %p2237_p2 }
  0x78   : > { %p2239_p1 = pmov %p2237_p2 }
  0x79   : > { %1783 = dma.done.wait (%p2238_p4), [#allocation16], 528  }
  0x7a   : > { %1785 = vsyncadd (%p2239_p1), [#allocation16], 4294966768  ;;  %v638_v0 = vld [vmem:[#allocation11 + $0x18] sm:$0xff]  ;;  %v637_v1 = vld [vmem:[#allocation11 + $0x10] sm:$0xff]  ;;  %vm610_vm0 = vcmask 261120   ;;  %vm699_vm1 = vcmask 64512  }
  0x7b   : > { %v605_v2 = vld [vmem:[#allocation9 + $0x18] sm:$0xff]  ;;  %658 = vmatpush.msra.mxu1 %v638_v0  ;;  %v604_v3 = vld [vmem:[#allocation9 + $0x10] sm:$0xff]  ;;  %v636_v4 = vld [vmem:[#allocation11 + $0x8] sm:$0xff]  ;;  %s1814_s7 = smov 104   ;;  %s1815_s17 = smov 120  }
  0x7c   : > { %626 = vmatpush.msra.mxu0 %v605_v2  ;;  %v603_v5 = vld [vmem:[#allocation9 + $0x8] sm:$0xff]  ;;  %v635_v6 = vld [vmem:[#allocation11] sm:$0xff]  ;;  %v601_v9 = vld [vmem:[%s499_s15] sm:$0xff]  ;;  %s1816_s16 = smov 112   ;;  %s2240_s1 = sld [smem:[#allocation35_spill]] }
  0x7d   : > { %659 = vmatpush.msra.mxu1 %v637_v1  ;;  %v602_v7 = vld [vmem:[#allocation9] sm:$0xff]  ;;  %v1432_v10 = vld [vmem:[%s2190_s6] ss:$0 sm:$0xff]  ;;  %v670_v16 = vld [vmem:[#allocation12 + $0x18] sm:$0xff]  ;;  %s1307_s11 = sshll.u32 %s1906_s28, 3  ;;  %s2241_s14 = sld [smem:[#allocation36_spill]] }
  0x7e   : > { %627 = vmatpush.msra.mxu0 %v604_v3  ;;  %v634_v8 = vld [vmem:[%s509_s26] sm:$0xff]  ;;  %v1433_v11 = vld [vmem:[%s2188_s4] ss:$0 sm:$0xff]  ;;  %690 = vmatpush.msra.mxu2 %v670_v16  ;;  %s600_s30 = scalar_lea.vmem [#allocation18], %s2069_s25  ;;  %s1076_s28 = scalar_lea.sflag [#allocation5], %s2066_s19 }
  0x7f   : > { %660 = vmatpush.msra.mxu1 %v636_v4  ;;  %v669_v17 = vld [vmem:[#allocation12 + $0x10] sm:$0xff]  ;;  %v668_v18 = vld [vmem:[#allocation12 + $0x8] sm:$0xff]  ;;  %v667_v19 = vld [vmem:[#allocation12] sm:$0xff]  ;;  %s1088_s26 = sshll.u32 %s600_s30, 4  ;;  %s1089_s26 = int_to_ptr.vmem [resolvable:$true] %s1088_s26 }
  0x80   : > { %628 = vmatpush.msra.mxu0 %v603_v5  ;;  %691 = vmatpush.msra.mxu2 %v669_v17  ;;  %v666_v20 = vld [vmem:[%s519_s27] sm:$0xff]  ;;  %v1434_v29 = vld [vmem:[#allocation14] ss:$0 sm:$0xff]  ;;  %v965_v16 = vld [vmem:[#allocation15] sm:$0xff] }
  0x81   : > { %661 = vmatpush.msra.mxu1 %v635_v6  ;;  %v1017_v17 = vld [vmem:[#allocation15 + $0x10] sm:$0xff] }
  0x82   : > { %629 = vmatpush.msra.mxu0 %v602_v7  ;;  %1288 = vmatmul.msk.f32.vlgmr.msra.gmra.mxu1 %vm610_vm0, %v634_v8  ;;  %v698_v58 = vld [vmem:[%s2240_s1] sm:$0xff] }
  0x83   : > { %1287 = vmatmul.msk.f32.vlgmr.msra.gmra.mxu0 %vm610_vm0, %v601_v9  ;;  %692 = vmatpush.msra.mxu2 %v668_v18  ;;  %v1044_v18 = vld [vmem:[#allocation15 + $0x18] sm:$0xff]  ;;  %s1086_s15 = scalar_lea.hbm %s2241_s14, %s1307_s11  ;;  %s1742_s25 = scalar_lea.hbm %s2241_s14, 16 }
  0x84   : > { %s1090_s27 = sshll.u32 %s1086_s15, 4  ;;  %s1091_s27 = int_to_ptr.hbm [resolvable:$true] %s1090_s27 }
  0x85   : > { %693 = vmatpush.msra.mxu2 %v667_v19  ;;  %s1736_s20 = sshra.s32 %s1091_s27, 4  ;;  %s1737_s20 = int_to_ptr.hbm [resolvable:$true] %s1736_s20 }
  0x86   : > { %1289 = vmatmul.msk.f32.vlgmr.msra.gmra.mxu2 %vm610_vm0, %v666_v20  ;;  %s1738_s3 = scalar_lea.hbm %s1737_s20, 8  ;;  %p1743_p6 = scmp.lt.s32.totalorder %s1737_s20, %s2241_s14 }
  0x87   : > { %p1739_p13 = scmp.ne.s32.totalorder %s1737_s20, %s1738_s3  ;;  %p1744_p11 = scmp.lt.s32.totalorder %s1742_s25, %s1738_s3 }
  0x89   : > { %p1740_p7 = pnand %p1739_p13, %p1967_p0  ;;  %p1745_p12 = por %p1744_p11, %p1743_p6 }
  0x8b   : > { %p1741_p10 = pneg %p1740_p7 }
  0x8d   : > { %p1746_p3 = pnand %p1745_p12, %p1741_p10 }
  0xff   : > { %v663_v12 = vpop.f32.mrf.mxu1 }
 0x100   : > { %v631_v13 = vpop.f32.mrf.mxu0  ;;  %v664_v14 = vadd.f32 %v1432_v10, %v663_v12 }
 0x101   : > { %v632_v15 = vadd.f32 %v1433_v11, %v631_v13 }
 0x102   : > { %899 = vrot.lane.b32.xlu2 %v664_v14, %s1814_s7  ;;  %764 = vrot.lane.b32.xlu1 %v664_v14, %s1815_s17 }
 0x103   : > { %832 = vrot.lane.b32.xlu0 %v664_v14, %s1816_s16  ;;  %1290 = vmatpush.xpose.msk.msra.mxu3 %vm699_vm1, %v664_v14 }
 0x106   : > { %1291 = vmatmul.msk.f32.vlgmr.msra.gmra.mxu3 %vm699_vm1, %v632_v15 }
 0x109   : > { %v695_v30 = vpop.f32.mrf.mxu2 }
 0x10a   : > { %897 = vrot.lane.b32.xlu2 %v632_v15, %s1814_s7  ;;  %762 = vrot.lane.b32.xlu1 %v632_v15, %s1815_s17  ;;  %v696_v31 = vadd.f32 %v1434_v29, %v695_v30 }
 0x10b   : > { %830 = vrot.lane.b32.xlu0 %v632_v15, %s1816_s16  ;;  %v968_v15 = vld [vmem:[#allocation15 + $0x8] sm:$0xff] }
 0x10c   : > { %756 = vmatpush.msrb.mxu3 %v696_v31 }
 0x15c   : > { %v900_v22 = vpop.permute.xlu2 %899 }
 0x164   : > { %v898_v26 = vpop.permute.xlu2 %897 }
 0x174   : > { %v765_v21 = vpop.permute.xlu1 %764 }
 0x175   : > { %v833_v23 = vpop.permute.xlu0 %832  ;;  %1293 = vmatpush.xpose.msk.msrb.mxu0 %vm699_vm1, %v765_v21 }
 0x176   : > { %1296 = vmatpush.xpose.msk.msrb.mxu2 %vm699_vm1, %v833_v23 }
 0x179   : > { %1299 = vmatpush.xpose.msk.msra.mxu0 %vm699_vm1, %v900_v22 }
 0x17a   : > { %987 = vmatpush.msra.mxu2 %v968_v15 }
 0x17c   : > { %v763_v24 = vpop.permute.xlu1 %762 }
 0x17d   : > { %v831_v25 = vpop.permute.xlu0 %830  ;;  %1294 = vmatmul.msk.f32.vlgmr.msrb.gmra.mxu0 %vm699_vm1, %v763_v24 }
 0x17e   : > { %1297 = vmatmul.msk.f32.vlgmr.msrb.gmra.mxu2 %vm699_vm1, %v831_v25  ;;  %1036 = vmatpush.msrb.mxu0 %v1017_v17 }
 0x185   : > { %1300 = vmatmul.msk.f32.vlgmr.msra.gmra.mxu0 %vm699_vm1, %v898_v26 }
 0x189   : > { %v723_v27 = vpop.f32.mrf.mxu3 }
 0x18a   : > { %v726_v28 = vsel %vm699_vm1, %v723_v27, -inf }
 0x18b   : > { %727 = vmax.xlane.f32.xlu0 %v726_v28 }
 0x1fa   : > { %v787_v32 = vpop.f32.mrf.mxu0 }
 0x1fb   : > { %v790_v33 = vsel %vm699_vm1, %v787_v32, -inf }
 0x1fc   : > { %791 = vmax.xlane.f32.xlu1 %v790_v33 }
 0x1fe   : > { %v728_v34 = vpop.xlane.xlu0 %727 }
 0x1ff   : > { %v729_v35 = vsub.f32 %v723_v27, %v728_v34 }
 0x201   : > { %v730_v36 = vmul.f32 1.442695, %v729_v35  ;;  %v855_v37 = vpop.f32.mrf.mxu2 }
 0x202   : > { %v858_v38 = vsel %vm699_vm1, %v855_v37, -inf  ;;  %v922_v39 = vpop.f32.mrf.mxu0 }
 0x203   : > { %1436 = vpow2.f32 %v730_v36  ;;  %859 = vmax.xlane.f32.xlu2 %v858_v38  ;;  %v925_v41 = vsel %vm699_vm1, %v922_v39, -inf }
 0x209   : > { %v1437_v40 = vpop.eup %1436 }
 0x20a   : > { %v732_v42 = vsel %vm699_vm1, %v1437_v40, 0.0 }
 0x20b   : > { %926 = vmax.xlane.f32.xlu2 %v925_v41  ;;  %733 = vadd.xlane.f32.xlu0 %v732_v42 }
 0x26f   : > { %v792_v43 = vpop.xlane.xlu1 %791 }
 0x270   : > { %v793_v44 = vsub.f32 %v787_v32, %v792_v43 }
 0x272   : > { %v794_v45 = vmul.f32 1.442695, %v793_v44 }
 0x274   : > { %1438 = vpow2.f32 %v794_v45 }
 0x276   : > { %v860_v46 = vpop.xlane.xlu2 %859 }
 0x277   : > { %v861_v47 = vsub.f32 %v855_v37, %v860_v46 }
 0x279   : > { %v862_v48 = vmul.f32 1.442695, %v861_v47 }
 0x27a   : > { %v1439_v49 = vpop.eup %1438 }
 0x27b   : > { %1440 = vpow2.f32 %v862_v48  ;;  %v796_v50 = vsel %vm699_vm1, %v1439_v49, 0.0 }
 0x27c   : > { %797 = vadd.xlane.f32.xlu1 %v796_v50 }
 0x27e   : > { %v927_v51 = vpop.xlane.xlu2 %926  ;;  %v734_v52 = vpop.xlane.xlu0 %733 }
 0x27f   : > { %v928_v53 = vsub.f32 %v922_v39, %v927_v51  ;;  %1442 = vrcp.f32 %v734_v52 }
 0x281   : > { %v1441_v54 = vpop.eup %1440  ;;  %v929_v55 = vmul.f32 1.442695, %v928_v53 }
 0x282   : > { %v864_v56 = vsel %vm699_vm1, %v1441_v54, 0.0 }
 0x283   : > { %1444 = vpow2.f32 %v929_v55  ;;  %865 = vadd.xlane.f32.xlu2 %v864_v56 }
 0x285   : > { %v1443_v57 = vpop.eup %1442 }
 0x286   : > { %v736_v59 = vmul.f32 %v1443_v57, %v1437_v40 }
 0x288   : > { %v737_v60 = vmul.f32 %v736_v59, %v698_v58 }
 0x289   : > { %v1445_v61 = vpop.eup %1444 }
 0x28a   : > { %1292 = vmatmul.msk.f32.vlgmr.msrb.gmra.mxu3 %vm699_vm1, %v737_v60  ;;  %v931_v62 = vsel %vm699_vm1, %v1445_v61, 0.0 }
 0x28b   : > { %932 = vadd.xlane.f32.xlu0 %v931_v62 }
 0x295   : > { %803 = vrot.lane.b32.xlu1 %v696_v31, %s1815_s17 }
 0x29b   : > { %870 = vrot.lane.b32.xlu2 %v696_v31, %s1816_s16 }
 0x29f   : > { %937 = vrot.lane.b32.xlu0 %v696_v31, %s1814_s7  ;;  %v1435_v31 = vld [vmem:[#allocation17] ss:$0 sm:$0xff] }
 0x2ef   : > { %v798_v0 = vpop.xlane.xlu1 %797 }
 0x2f6   : > { %v866_v63 = vpop.xlane.xlu2 %865 }
 0x2f7   : > { %1446 = vrcp.f32 %v866_v63 }
 0x2f8   : > { %1448 = vrcp.f32 %v798_v0 }
 0x2fd   : > { %v1447_v1 = vpop.eup %1446 }
 0x2fe   : > { %v868_v2 = vmul.f32 %v1447_v1, %v1441_v54  ;;  %v871_v3 = vpop.permute.xlu2 %870  ;;  %v1449_v4 = vpop.eup %1448 }
 0x2ff   : > { %891 = vmatpush.msra.mxu3 %v871_v3  ;;  %v933_v6 = vpop.xlane.xlu0 %932  ;;  %v800_v7 = vmul.f32 %v1449_v4, %v1439_v49 }
 0x300   : > { %v869_v5 = vmul.f32 %v868_v2, %v698_v58  ;;  %1450 = vrcp.f32 %v933_v6 }
 0x301   : > { %v801_v9 = vmul.f32 %v800_v7, %v698_v58  ;;  %1010 = vmatpush.msrb.mxu3 %v965_v16 }
 0x302   : > { %1298 = vmatmul.msk.f32.vlgmr.msra.gmra.mxu3 %vm699_vm1, %v869_v5 }
 0x306   : > { %v1451_v10 = vpop.eup %1450 }
 0x307   : > { %v804_v8 = vpop.permute.xlu1 %803  ;;  %v935_v11 = vmul.f32 %v1451_v10, %v1445_v61 }
 0x308   : > { %824 = vmatpush.msrb.mxu1 %v804_v8 }
 0x309   : > { %1295 = vmatmul.msk.f32.vlgmr.msrb.gmra.mxu1 %vm699_vm1, %v801_v9  ;;  %v936_v13 = vmul.f32 %v935_v11, %v698_v58 }
 0x30d   : > { %v758_v12 = vpop.f32.mrf.mxu3 }
 0x30e   : > { %761 = vst.msk [vmem:[#allocation2] sm:$0xff] %vm699_vm1, %v758_v12 }
 0x311   : > { %v938_v14 = vpop.permute.xlu0 %937 }
 0x312   : > { %958 = vmatpush.msra.mxu1 %v938_v14 }
 0x313   : > { %1301 = vmatmul.msk.f32.vlgmr.msra.gmra.mxu1 %vm699_vm1, %v936_v13 }
 0x314   : > { %1063 = vmatpush.msrb.mxu1 %v1044_v18 }
 0x385   : > { %v893_v19 = vpop.f32.mrf.mxu3 }
 0x386   : > { %896 = vst.msk [vmem:[#allocation2 + $0x10] sm:$0xff] %vm699_vm1, %v893_v19  ;;  %v826_v20 = vpop.f32.mrf.mxu1 }
 0x387   : > { %829 = vst.msk [vmem:[#allocation2 + $0x8] sm:$0xff] %vm699_vm1, %v826_v20 }
 0x390   : > { %v960_v21 = vpop.f32.mrf.mxu1 }
 0x391   : > { %963 = vst.msk [vmem:[#allocation2 + $0x18] sm:$0xff] %vm699_vm1, %v960_v21 }
 0x398   : > { %v967_v22 = vld [vmem:[#allocation2 + $0x1] ss:$4 sm:$0xff]  ;;  %v964_v23 = vld [vmem:[#allocation2] ss:$4 sm:$0xff]  ;;  %v1016_v24 = vld [vmem:[#allocation2 + $0x2] ss:$4 sm:$0xff] }
 0x399   : > { %1302 = vmatmul.msk.f32.vlgmr.msra.gmra.mxu2 %vm699_vm1, %v967_v22  ;;  %1303 = vmatmul.msk.f32.vlgmr.msrb.gmra.mxu3 %vm699_vm1, %v964_v23  ;;  %v1043_v25 = vld [vmem:[#allocation2 + $0x3] ss:$4 sm:$0xff] }
 0x39a   : > { %1304 = vmatmul.msk.f32.vlgmr.msrb.gmra.mxu0 %vm699_vm1, %v1016_v24  ;;  %1305 = vmatmul.msk.f32.vlgmr.msrb.gmra.mxu1 %vm699_vm1, %v1043_v25 }
 0x417   : > { %v1038_v29 = vpop.f32.mrf.mxu0  ;;  %v1065_v32 = vpop.f32.mrf.mxu1 }
 0x41c   : > { %v989_v26 = vpop.f32.mrf.mxu2  ;;  %v1012_v27 = vpop.f32.mrf.mxu3 }
 0x41d   : > { %v1013_v28 = vadd.f32 %v1012_v27, %v989_v26 }
 0x41f   : > { %v1041_v30 = vadd.f32 %v1038_v29, %v1013_v28 }
 0x421   : > { %v1068_v33 = vadd.f32 %v1065_v32, %v1041_v30 }
 0x423   : > { %v1073_v34 = vadd.f32 %v1435_v31, %v1068_v33 }
 0x425   : > { %1074 = vst.msk [vmem:[%s600_s30] sm:$0xff] %vm610_vm0, %v1073_v34 }
 0x426   : > { %1749 = shalt.err (!%p1746_p3)
}
 0x427   : > { %1340 = dma.vmem_to_hbm [thread:$0]  (%p1967_p0), %s1089_s26, 128, %s1091_s27, %s1076_s28  }
 0x428 PF: > { %s2243_s19 = sld [smem:[#allocation25_spill]] }
 0x429   : > { %s2245_s12 = sld [smem:[#allocation26_spill]] }
 0x42e   : > { %s1102_s13 = sand.u32 1, %s2243_s19  }
 0x42f   : > { %p2246_p8 = scmp.ge.s32.totalorder %s2245_s12, 2  ;;  %s1103_s1 = scalar_lea.sflag [#allocation5], %s1102_s13 }
 0x431   : > { %p1372_p9 = pnand %p2246_p8, %p1973_p5 }
 0x433   : > { %p1373_p2 = pneg %p1372_p9 }
 0x435   : > { %1787 = dma.done.wait (%p1373_p2), %s1103_s1, 128  }
 0x436   : > { %1789 = vsyncadd (%p1373_p2), %s1103_s1, 4294967168  ;;  %s2247_s24 = sld [smem:[#allocation27_spill]]  ;;  %s2249_s21 = smov %s1796_s22 }
 0x437   : > { %s2248_s11 = sld [smem:[#allocation28_spill]]  ;;  %s2250_s22 = smov %s1800_s23 }
 0x43c   : > { %p31_p4 = scmp.ge.s32.totalorder %s2247_s24, 4  }
 0x43d   : > { %s2251_s23 = smov %s2248_s11 }
 0x43e   :  { %33 = sbr.rel (!%p31_p4) target bundleno = 17 (0x11), region = 164 }
 0x443   :  { %1109 = vsyncpa [#allocation4], 1 }
 0x444   :  { %1111 = vsyncpa [#allocation4 + $0x1], 1 }
 0x445   :  { %1112 = vsyncpa [#allocation7], 1 }
 0x446   :  { %1114 = vsyncpa [#allocation7 + $0x1], 1 }
 0x447   :  { %1115 = vsyncpa [#allocation10], 1 }
 0x448   :  { %1116 = vsyncpa [#allocation13], 1 }
 0x449   :  { %1117 = vsyncpa [#allocation16], 1 }
 0x44a   :  { %1118 = vsyncpa [#allocation5], 1 }
 0x44b   :  { %1120 = vsyncpa [#allocation5 + $0x1], 1 }

</bundles_post_ra>
